<compile_context>
chip_gen: v7x
topology: tpu7x:2x2x1
jax: 0.10.0
libtpu: 0.0.40
codegen_flags: <defaults>
</compile_context>

<pallas_src>
import jax
import jax.numpy as jnp
from jax.experimental import pallas as pl
from jax.experimental.pallas import tpu as pltpu

RED_DIM = 180   # input feature dim (PCA-reduced)
HID = 70        # hidden units
OUT = 5         # output classes

TB_MAX = 16384          # hard ceiling on batch-tile rows
_SMALL_BATCH = 512      # below this, one full-batch tile (no grid overhead)
_BYTES_PER_ROW = 8 * 1024  # conservative lane-padded VMEM footprint / batch row
                           # (2x f32 x buffers + 2x f32 out buffers + f32 temps)


def _round_up(n: int, m: int) -> int:
    return ((n + m - 1) // m) * m


def _vmem_budget_bytes() -> int:
    """~75% of physical VMEM (v5e/v6e: 128 MiB, v7x: 64 MiB), capped at 96 MiB."""
    try:
        cap = int(pltpu.get_tpu_info().vmem_capacity_bytes)
    except Exception:
        cap = 64 << 20  # conservative fallback (v7x-sized)
    return min(96 << 20, (cap * 3) // 4)


def _choose_tb(batch: int, vmem_budget: int) -> int:
    """Pick the batch-tile size.

    Small batches: one tile covering the whole batch (block == full array dim,
    so no sublane-divisibility constraint and zero extra grid steps).
    Large batches: as big as the VMEM budget allows (amortize per-step
    overhead), but with >= 2 grid steps so v7x megacore gets both cores busy.
    """
    if batch <= _SMALL_BATCH:
        return batch
    tb = min(TB_MAX, vmem_budget // _BYTES_PER_ROW)
    tb = max(16, (tb // 16) * 16)
    tb = min(tb, _round_up((batch + 1) // 2, 16))  # >= 2 "parallel" grid steps
    return tb


def mlffn_kernel(x_ref, w1_ref, b1_ref, w2_ref, b2_ref, o_ref):
    # x tile arrives in native f32 (streamed straight from HBM); cast to bf16
    # on the VPU right before the MXU matmul — hides under the DMA.
    x = x_ref[...].astype(w1_ref.dtype)

    # Linear(180, 70) + bias + ReLU — MXU matmul with f32 accumulation.
    h = jnp.dot(x, w1_ref[...], preferred_element_type=jnp.float32)
    h = jnp.maximum(h + b1_ref[...], 0.0)                       # (tb, 70) f32

    # Linear(70, 5) in f32 (tiny K/N: negligible MXU cost, tighter parity
    # with the PyTorch f32 forward).
    logits = jnp.dot(h, w2_ref[...], preferred_element_type=jnp.float32)
    logits = logits + b2_ref[...]                               # (tb, 5) f32

    # Row-wise softmax (dim=1), numerically stabilized like PyTorch.
    m = jnp.max(logits, axis=-1, keepdims=True)
    e = jnp.exp(logits - m)
    denom = jnp.sum(e, axis=-1, keepdims=True)
    o_ref[...] = (e * pl.reciprocal(denom, approx=True)).astype(o_ref.dtype)


def prepare_mlffn_params(w1, b1, w2, b2):
    """One-time weight prep (hoist out of the per-call path).

    w1: (70, 180), b1: (70,), w2: (5, 70), b2: (5,)  — nn.Linear layouts.
    """
    w1_t = jnp.asarray(w1, jnp.float32).T.astype(jnp.bfloat16)  # (180, 70) bf16
    b1_2d = jnp.asarray(b1, jnp.float32).reshape(1, HID)        # (1, 70)  f32
    w2_t = jnp.asarray(w2, jnp.float32).T                       # (70, 5)  f32
    b2_2d = jnp.asarray(b2, jnp.float32).reshape(1, OUT)        # (1, 5)   f32
    return w1_t, b1_2d, w2_t, b2_2d


def mlffn_forward(x, params, *, tb=None):
    """x: (B, 180) f32. Returns (B, 5) f32 softmax probabilities."""
    w1_t, b1_2d, w2_t, b2_2d = params
    x = jnp.asarray(x, jnp.float32)          # native dtype streamed to the kernel
    batch = x.shape[0]

    vmem_budget = _vmem_budget_bytes()
    if tb is None:
        tb = _choose_tb(batch, vmem_budget)
    tb = min(tb, batch) if tb >= batch else tb
    if tb < batch and tb % 8 != 0:
        raise ValueError("batch tile must be a multiple of 8 when it does not "
                         "cover the whole batch")
    n_tiles = -(-batch // tb)                # ragged last block handled by Pallas

    cost = pl.CostEstimate(
        flops=2 * batch * (RED_DIM * HID + HID * OUT),
        transcendentals=batch * OUT,
        bytes_accessed=(batch * RED_DIM * 4            # x in (f32)
                        + batch * OUT * 4              # probs out (f32)
                        + RED_DIM * HID * 2            # w1 (bf16)
                        + HID * OUT * 4                # w2 (f32)
                        + (HID + OUT) * 4),            # biases
    )

    return pl.pallas_call(
        mlffn_kernel,
        out_shape=jax.ShapeDtypeStruct((batch, OUT), jnp.float32),
        grid=(n_tiles,),
        in_specs=[
            # x streams through VMEM in (tb, 180) tiles (double-buffered).
            pl.BlockSpec((tb, RED_DIM), lambda i: (i, 0)),
            # Weights / biases: constant block index -> resident, no re-DMA.
            pl.BlockSpec((RED_DIM, HID), lambda i: (0, 0)),
            pl.BlockSpec((1, HID), lambda i: (0, 0)),
            pl.BlockSpec((HID, OUT), lambda i: (0, 0)),
            pl.BlockSpec((1, OUT), lambda i: (0, 0)),
        ],
        out_specs=pl.BlockSpec((tb, OUT), lambda i: (i, 0)),
        compiler_params=pltpu.CompilerParams(
            dimension_semantics=("parallel",),         # megacore split on v7x
            vmem_limit_bytes=int(vmem_budget)),
        cost_estimate=cost,
    )(x, w1_t, b1_2d, w2_t, b2_2d)


def mlffn_reference(x, w1, b1, w2, b2):
    h = jnp.maximum(x @ w1.T + b1, 0.0)
    logits = h @ w2.T + b2
    return jax.nn.softmax(logits, axis=1)


if __name__ == "__main__":
    key = jax.random.PRNGKey(0)
    k_x, k_w1, k_b1, k_w2, k_b2 = jax.random.split(key, 5)

    # Deterministic synthetic parameters (shapes match the nn.Linear layers).
    w1 = jax.random.normal(k_w1, (HID, RED_DIM), dtype=jnp.float32) * (1.0 / jnp.sqrt(RED_DIM))
    b1 = jax.random.normal(k_b1, (HID,), dtype=jnp.float32) * 0.01
    w2 = jax.random.normal(k_w2, (OUT, HID), dtype=jnp.float32) * (1.0 / jnp.sqrt(HID))
    b2 = jax.random.normal(k_b2, (OUT,), dtype=jnp.float32) * 0.01

    params = prepare_mlffn_params(w1, b1, w2, b2)  # one-time weight prep

    # Case 1: small batch -> single full-batch tile.
    batch = 8
    x = jax.random.normal(k_x, (batch, RED_DIM), dtype=jnp.float32)
    out = jax.block_until_ready(mlffn_forward(x, params))
    ref = jax.block_until_ready(mlffn_reference(x, w1, b1, w2, b2))
    assert out.shape == (batch, OUT)
    # bf16 first matmul + approx reciprocal -> looser tolerance (probs in [0,1]).
    assert jnp.allclose(out, ref, atol=2e-2, rtol=2e-2), "mismatch vs reference (case 1)"
    assert jnp.allclose(jnp.sum(out, axis=1), jnp.ones((batch,)), atol=1e-2)

    # Case 2: forced small tile -> multi-step grid with a ragged last block
    # (40 = 2 * 16 + 8), exercising the pad-free tail path.
    batch2 = 40
    x2 = jax.random.normal(k_x, (batch2, RED_DIM), dtype=jnp.float32)
    out2 = jax.block_until_ready(mlffn_forward(x2, params, tb=16))
    ref2 = jax.block_until_ready(mlffn_reference(x2, w1, b1, w2, b2))
    assert out2.shape == (batch2, OUT)
    assert jnp.allclose(out2, ref2, atol=2e-2, rtol=2e-2), "mismatch vs reference (case 2)"
    assert jnp.allclose(jnp.sum(out2, axis=1), jnp.ones((batch2,)), atol=1e-2)

    print("KERNEL_OK")
</pallas_src>

<mosaic_0001>
module attributes {stable_mosaic.version = 11 : i64} {
  func.func @mlffn_kernel(%arg0: i32, %arg1: memref<8x180xf32, #tpu.memory_space<vmem>>, %arg2: memref<180x70xbf16, #tpu.memory_space<vmem>>, %arg3: memref<1x70xf32, #tpu.memory_space<vmem>>, %arg4: memref<70x5xf32, #tpu.memory_space<vmem>>, %arg5: memref<1x5xf32, #tpu.memory_space<vmem>>, %arg6: memref<8x5xf32, #tpu.memory_space<vmem>>) attributes {dimension_semantics = [#tpu.dimension_semantics<parallel>], iteration_bounds = array<i64: 1>, scalar_prefetch = 0 : i64, scratch_operands = 0 : i64, tpu.core_type = #tpu.core_type<tc>, window_params = [{transform_indices = @transform_0, window_bounds = array<i64: 8, 180>}, {pipeline_mode = #tpu.pipeline_mode<synchronous>, transform_indices = @transform_1, window_bounds = array<i64: 180, 70>}, {pipeline_mode = #tpu.pipeline_mode<synchronous>, transform_indices = @transform_2, window_bounds = array<i64: 1, 70>}, {pipeline_mode = #tpu.pipeline_mode<synchronous>, transform_indices = @transform_3, window_bounds = array<i64: 70, 5>}, {pipeline_mode = #tpu.pipeline_mode<synchronous>, transform_indices = @transform_4, window_bounds = array<i64: 1, 5>}, {transform_indices = @transform_5, window_bounds = array<i64: 8, 5>}]} {
    %c0 = arith.constant 0 : index
    %c0_0 = arith.constant 0 : index
    %0 = vector.load %arg1[%c0, %c0_0] : memref<8x180xf32, #tpu.memory_space<vmem>>, vector<8x180xf32>
    %1 = arith.truncf %0 : vector<8x180xf32> to vector<8x180xbf16>
    %c0_1 = arith.constant 0 : index
    %c0_2 = arith.constant 0 : index
    %2 = vector.load %arg2[%c0_1, %c0_2] : memref<180x70xbf16, #tpu.memory_space<vmem>>, vector<180x70xbf16>
    %cst = arith.constant dense<0.000000e+00> : vector<8x70xf32>
    %3 = tpu.matmul %1, %2, %cst {dimension_numbers = #tpu.dot_dimension_numbers<[1], [0], [0], [1], [0, 0, 1, 1], [], []>} : vector<8x180xbf16>, vector<180x70xbf16>, vector<8x70xf32> -> vector<8x70xf32>
    %c0_3 = arith.constant 0 : index
    %c0_4 = arith.constant 0 : index
    %4 = vector.load %arg3[%c0_3, %c0_4] : memref<1x70xf32, #tpu.memory_space<vmem>>, vector<1x70xf32>
    %5 = vector.broadcast %4 : vector<1x70xf32> to vector<8x70xf32>
    %6 = arith.addf %3, %5 : vector<8x70xf32>
    %cst_5 = arith.constant 0.000000e+00 : f32
    %7 = vector.broadcast %cst_5 : f32 to vector<8x70xf32>
    %8 = arith.maximumf %6, %7 : vector<8x70xf32>
    %c0_6 = arith.constant 0 : index
    %c0_7 = arith.constant 0 : index
    %9 = vector.load %arg4[%c0_6, %c0_7] : memref<70x5xf32, #tpu.memory_space<vmem>>, vector<70x5xf32>
    %cst_8 = arith.constant dense<0.000000e+00> : vector<8x5xf32>
    %10 = tpu.matmul %8, %9, %cst_8 {dimension_numbers = #tpu.dot_dimension_numbers<[1], [0], [0], [1], [0, 0, 1, 1], [], []>} : vector<8x70xf32>, vector<70x5xf32>, vector<8x5xf32> -> vector<8x5xf32>
    %c0_9 = arith.constant 0 : index
    %c0_10 = arith.constant 0 : index
    %11 = vector.load %arg5[%c0_9, %c0_10] : memref<1x5xf32, #tpu.memory_space<vmem>>, vector<1x5xf32>
    %12 = vector.broadcast %11 : vector<1x5xf32> to vector<8x5xf32>
    %13 = arith.addf %10, %12 : vector<8x5xf32>
    %cst_11 = arith.constant dense<0xFF800000> : vector<8xf32>
    %14 = vector.multi_reduction <maximumf>, %13, %cst_11 [1] : vector<8x5xf32> to vector<8xf32>
    %15 = vector.shape_cast %14 : vector<8xf32> to vector<8x1xf32>
    %16 = vector.broadcast %15 : vector<8x1xf32> to vector<8x5xf32>
    %17 = arith.subf %13, %16 : vector<8x5xf32>
    %18 = math.exp %17 : vector<8x5xf32>
    %cst_12 = arith.constant dense<0.000000e+00> : vector<8xf32>
    %19 = vector.multi_reduction <add>, %18, %cst_12 [1] : vector<8x5xf32> to vector<8xf32>
    %20 = vector.shape_cast %19 : vector<8xf32> to vector<8x1xf32>
    %21 = tpu.reciprocal %20 {approx = true} : vector<8x1xf32> -> vector<8x1xf32>
    %22 = vector.broadcast %21 : vector<8x1xf32> to vector<8x5xf32>
    %23 = arith.mulf %18, %22 : vector<8x5xf32>
    %c0_13 = arith.constant 0 : index
    %c0_14 = arith.constant 0 : index
    %24 = vector.load %arg6[%c0_13, %c0_14] : memref<8x5xf32, #tpu.memory_space<vmem>>, vector<8x5xf32>
    tpu.vector_store %arg6[%c0_13, %c0_14], %23 {strides = array<i32>} : memref<8x5xf32, #tpu.memory_space<vmem>>, vector<8x5xf32>,
    return
  }
  func.func @transform_0(%arg0: i32) -> (i32, i32) {
    %c0_i32 = arith.constant 0 : i32
    %c0_i32_0 = arith.constant 0 : i32
    return %arg0, %c0_i32 : i32, i32
  }
  func.func @transform_1(%arg0: i32) -> (i32, i32) {
    %c0_i32 = arith.constant 0 : i32
    %c0_i32_0 = arith.constant 0 : i32
    %c0_i32_1 = arith.constant 0 : i32
    return %c0_i32, %c0_i32_0 : i32, i32
  }
  func.func @transform_2(%arg0: i32) -> (i32, i32) {
    %c0_i32 = arith.constant 0 : i32
    %c0_i32_0 = arith.constant 0 : i32
    %c0_i32_1 = arith.constant 0 : i32
    return %c0_i32, %c0_i32_0 : i32, i32
  }
  func.func @transform_3(%arg0: i32) -> (i32, i32) {
    %c0_i32 = arith.constant 0 : i32
    %c0_i32_0 = arith.constant 0 : i32
    %c0_i32_1 = arith.constant 0 : i32
    return %c0_i32, %c0_i32_0 : i32, i32
  }
  func.func @transform_4(%arg0: i32) -> (i32, i32) {
    %c0_i32 = arith.constant 0 : i32
    %c0_i32_0 = arith.constant 0 : i32
    %c0_i32_1 = arith.constant 0 : i32
    return %c0_i32, %c0_i32_0 : i32, i32
  }
  func.func @transform_5(%arg0: i32) -> (i32, i32) {
    %c0_i32 = arith.constant 0 : i32
    %c0_i32_0 = arith.constant 0 : i32
    return %arg0, %c0_i32 : i32, i32
  }
}

</mosaic_0001>

<bundles_post_ra>
// kernel: tpu_custom_call.1
= control target key start
LH: loop header
LB: loop body
LE: loop exit
PB: predicated region body
PF: predicated region fallthrough
CT: control target
= control target key end

     0   :  { %v400_v1 = vmov 0   ;;  %v401_v3 = vmov 0.0|0.0   ;;  %vm125_vm0 = vcmask 424960   ;;  %s525_s0 = inlined_call_operand.vmem [shape: f32[8,180], index: 0, kind: input, shape index: {}]   ;;  %s526_s1 = inlined_call_operand.vmem [shape: bf16[180,70], index: 1, kind: input, shape index: {}]   ;;  %s527_s2 = inlined_call_operand.vmem [shape: f32[1,70], index: 2, kind: input, shape index: {}]   ;;  %s528_s3 = inlined_call_operand.vmem [shape: f32[70,5], index: 3, kind: input, shape index: {}]   ;;  %s529_s4 = inlined_call_operand.vmem [shape: f32[1,5], index: 4, kind: input, shape index: {}]   ;;  %s530_s5 = inlined_call_operand.hbm [shape: f32[8,5], index: 5, kind: output, shape index: {}]  }
   0x1   :  { %v360_v0 = vld [vmem:[%s526_s1] sm:$0xff]   ;;  %133 = vmatprep.subr.bf16.mxu0 %v400_v1  ;;  %v361_v2 = vld [vmem:[%s526_s1 + $0x8] sm:$0xff]   ;;  %343 = vmatprep.subr.bf16.mxu1 %v401_v3  ;;  %v362_v4 = vld [vmem:[%s526_s1 + $0x10] sm:$0xff]  }
   0x2   :  { %134 = vmatpush1.bf16.msra.mxu0 %v360_v0  ;;  %v363_v5 = vld [vmem:[%s526_s1 + $0x18] sm:$0xff]   ;;  %v23_v6 = vld [vmem:[%s525_s0 + $0x8] sm:$0xff]  ;;  %v174_v8 = vld [vmem:[%s528_s3] sm:$0xff] }
   0x3   :  { %135 = vmatprep.subr.bf16.mxu0 %v400_v1  ;;  %v25_v7 = vpack.c.bf16 %v23_v6, %v23_v6  ;;  %v175_v9 = vld [vmem:[%s528_s3 + $0x8] sm:$0xff]  ;;  %v176_v11 = vld [vmem:[%s528_s3 + $0x10] sm:$0xff]  ;;  %v177_v12 = vld [vmem:[%s528_s3 + $0x18] sm:$0xff] }
   0x4   :  { %v344_v10 = vpack.c.bf16 %v175_v9, %v174_v8  ;;  %v364_v13 = vld [vmem:[%s526_s1 + $0x20] sm:$0xff]  }
   0x5   :  { %308 = vmatprep.mubr.msk.bf16.mxu0 %vm125_vm0, %v25_v7 }
   0x6   :  { %136 = vmatpush1.bf16.msra.mxu0 %v361_v2 }
   0x7   :  { %137 = vmatprep.subr.bf16.mxu0 %v400_v1 }
   0xa   :  { %138 = vmatpush1.bf16.msra.mxu0 %v362_v4 }
   0xb   :  { %139 = vmatprep.subr.bf16.mxu0 %v400_v1 }
   0xe   :  { %140 = vmatpush1.bf16.msra.mxu0 %v363_v5 }
   0xf   :  { %10 = vsyncpa [#allocation3], 0  ;;  %141 = vmatprep.subr.bf16.mxu0 %v400_v1  ;;  %345 = vmatpush3.bf16.msra.mxu1 %v344_v10  ;;  %v347_v14 = vpack.c.bf16 %v177_v12, %v176_v11  ;;  %v178_v15 = vld [vmem:[%s528_s3 + $0x20] sm:$0xff]  ;;  %v179_v16 = vld [vmem:[%s528_s3 + $0x28] sm:$0xff]  ;;  %vm129_vm1 = vcmask 1041408   ;;  %v402_v31 = vmov 0.0  }
  0x10   :  { %346 = vmatprep.subr.bf16.mxu1 %v401_v3  ;;  %v365_v17 = vld [vmem:[%s526_s1 + $0x28] sm:$0xff]   ;;  %v350_v18 = vpack.c.bf16 %v179_v16, %v178_v15  ;;  %v366_v19 = vld [vmem:[%s526_s1 + $0x30] sm:$0xff]   ;;  %v367_v20 = vld [vmem:[%s526_s1 + $0x38] sm:$0xff]   ;;  %vm194_vm2 = vcmask 1045504   ;;  %vm403_vm3 = vmmov 0   ;;  %vm190_vm4 = vcmask 572416  }
  0x11   :  { %v368_v21 = vld [vmem:[%s526_s1 + $0x40] sm:$0xff]   ;;  %v369_v22 = vld [vmem:[%s526_s1 + $0x48] sm:$0xff]   ;;  %v370_v23 = vld [vmem:[%s526_s1 + $0x50] sm:$0xff]   ;;  %340 = vmatprep.mubr.msk.f32.mxu1 %vm403_vm3, %v402_v31  ;;  %vm268_vm5 = vcmask 39936  }
  0x12   :  { %142 = vmatpush1.bf16.msra.mxu0 %v364_v13  ;;  %v371_v24 = vld [vmem:[%s526_s1 + $0x58] ss:$0 sps:$4 sm:$0x33]   ;;  %v22_v25 = vld [vmem:[%s525_s0] sm:$0xff]  ;;  %v180_v28 = vld [vmem:[%s528_s3 + $0x30] sm:$0xff] }
  0x13   :  { %143 = vmatprep.subr.bf16.mxu0 %v400_v1  ;;  %348 = vmatpush3.bf16.msra.mxu1 %v347_v14  ;;  %v131_v26 = vsel %vm129_vm1, %v371_v24, 0  ;;  %v24_v27 = vpack.c.bf16 %v22_v25, %v22_v25  ;;  %v181_v29 = vld [vmem:[%s528_s3 + $0x38] sm:$0xff]  ;;  %v182_v32 = vld [vmem:[%s528_s3 + $0x40] sm:$0x3f] }
  0x14   :  { %349 = vmatprep.subr.bf16.mxu1 %v401_v3  ;;  %v353_v30 = vpack.c.bf16 %v181_v29, %v180_v28  ;;  %v295_v33 = vld [vmem:[%s527_s2] ss:$0 sm:$0xff]  ;;  %s404_s2 = smov [#allocation2]  }
  0x15   :  { %v309_v40 = vld [vmem:[%s529_s4] ss:$0 sm:$0xff]  ;;  %s287_s3 = sshll.u32 %s404_s2, 4  ;;  %s288_s3 = int_to_ptr.vmem [resolvable:$true] %s287_s3 }
  0x16   :  { %144 = vmatpush1.bf16.msra.mxu0 %v365_v17  ;;  %s376_s4 = scalar_lea.vmem %s288_s3, 128  ;;  %p381_p1 = scmp.lt.s32.totalorder %s288_s3, %s288_s3 }
  0x17   :  { %145 = vmatprep.subr.bf16.mxu0 %v400_v1  ;;  %351 = vmatpush3.bf16.msra.mxu1 %v350_v18  ;;  %p377_p0 = scmp.ne.s32.totalorder %s288_s3, %s376_s4  ;;  %p382_p2 = scmp.lt.s32.totalorder %s376_s4, %s376_s4 }
  0x18   :  { %352 = vmatprep.subr.bf16.mxu1 %v401_v3 }
  0x19   :  { %p383_p3 = por %p382_p2, %p381_p1 }
  0x1a   :  { %146 = vmatpush1.bf16.msra.mxu0 %v366_v19 }
  0x1b   :  { %147 = vmatprep.subr.bf16.mxu0 %v400_v1  ;;  %354 = vmatpush3.bf16.msra.mxu1 %v353_v30  ;;  %p384_p4 = pnand %p383_p3, %p377_p0 }
  0x1c   :  { %338 = vmatprep.subr.mxu1 %v402_v31 }
  0x1e   :  { %148 = vmatpush1.bf16.msra.mxu0 %v367_v20 }
  0x1f   :  { %149 = vmatprep.subr.bf16.mxu0 %v400_v1  ;;  %339 = vmatpush3.msk.msra.mxu1 %vm194_vm2, %v182_v32 }
  0x22   :  { %150 = vmatpush1.bf16.msra.mxu0 %v368_v21 }
  0x23   :  { %151 = vmatprep.subr.bf16.mxu0 %v400_v1 }
  0x26   :  { %152 = vmatpush1.bf16.msra.mxu0 %v369_v22 }
  0x27   :  { %153 = vmatprep.subr.bf16.mxu0 %v400_v1 }
  0x2a   :  { %154 = vmatpush1.bf16.msra.mxu0 %v370_v23 }
  0x2b   :  { %155 = vmatprep.subr.bf16.mxu0 %v400_v1 }
  0x2e   :  { %156 = vmatpush1.bf16.msra.mxu0 %v131_v26 }
  0x31   :  { %166 = vmatmul.mubr.bf16.vlgmr.msra.gmra.mrb[0].mxu0 %v24_v27 }
 0x104   :  { %v167_v34 = vpop.f32.mrb[0].mxu0 }
 0x105   :  { %v168_v35 = vadd.f32 %v295_v33, %v167_v34  ;;  %v169_v36 = vpop.f32.mrb[1].mxu0 }
 0x106   :  { %v170_v37 = vpop.f32.mrb[2].mxu0 }
 0x107   :  { %v173_v38 = vmax.f32 %v168_v35, 0.0  ;;  %v171_v39 = vpop.f32.mrb[3].mxu0 }
 0x109   :  { %341 = vmatmul.mubr.msk.f32.vlgmr.msra.gmra.mrb[0].mxu1 %vm190_vm4, %v173_v38 }
 0x1dc   :  { %v264_v41 = vpop.f32.mrb[0].mxu1 }
 0x1dd   :  { %v265_v42 = vadd.f32 %v309_v40, %v264_v41  ;;  %v342_v43 = vpop.f32.mrb[1].mxu1 }
 0x1df   :  { %v269_v44 = vsel %vm268_vm5, %v265_v42, -inf }
 0x1e0   :  { %270 = vmax.xlane.f32.xlu0 %v269_v44 }
 0x26d   :  { %v271_v45 = vpop.xlane.xlu0 %270 }
 0x26e   :  { %v272_v46 = vsub.f32 %v265_v42, %v271_v45 }
 0x270   :  { %v273_v47 = vmul.f32 1.442695, %v272_v46 }
 0x272   :  { %372 = vpow2.f32 %v273_v47 }
 0x27c   :  { %v373_v48 = vpop.eup %372 }
 0x27d   :  { %v275_v49 = vsel %vm268_vm5, %v373_v48, 0.0 }
 0x27e   :  { %276 = vadd.xlane.f32.xlu0 %v275_v49 }
 0x30b   :  { %v277_v50 = vpop.xlane.xlu0 %276 }
 0x30c   :  { %374 = vrcp.f32 %v277_v50 }
 0x316   :  { %v375_v51 = vpop.eup %374 }
 0x317   :  { %v279_v52 = vmul.f32 %v375_v51, %v373_v48 }
 0x319   :  { %280 = vst.msk [vmem:[#allocation2] sm:$0xff] %vm268_vm5, %v279_v52 }
 0x31a   :  { %387 = shalt.err (!%p384_p4)
}
 0x31b   :  { %s388_s18 = scalar_lea.hbm %s530_s5, 128 }
 0x31c   :  { %p389_p5 = scmp.ne.s32.totalorder %s530_s5, %s388_s18  ;;  %p392_p6 = scmp.lt.u32.totalorder %s388_s18, %s530_s5 }
 0x31e   :  { %p394_p7 = pnand %p392_p6, %p389_p5 }
 0x320   :  { %397 = shalt.err (!%p394_p7)
}
 0x321   :  { %290 = dma.vmem_to_hbm [thread:$0]  %s288_s3, 128, %s530_s5, [#allocation3]  }
 0x322   :  { %398 = dma.done.wait [#allocation3], 128  }
 0x323   :  { %399 = vsyncadd [#allocation3], 4294967168 }
 0x324   :  { %294 = vsyncpa [#allocation3], 1 }

</bundles_post_ra>
